<compile_context>
chip_gen: v7x
topology: tpu7x:2x2x1
jax: 0.10.0
libtpu: 0.0.40
codegen_flags: <defaults>
</compile_context>

<pallas_src>
import jax
import jax.numpy as jnp
from jax.experimental import pallas as pl
from jax.experimental.pallas import tpu as pltpu

LAYER_NORM_EPS = 1e-12  # BertLayerNorm default


def _text_embedding_kernel(ids_smem,       # (B, T) int32   scalar-prefetch (SMEM)
                           word_hbm,       # (V, H)         HBM-resident (pl.ANY)
                           pos_ref,        # (Tt, H)        VMEM block (positions t*Tt .. t*Tt+Tt-1)
                           tt_ref,         # (1, Tt, 1) i32 VMEM block (token-type ids as a column)
                           type_ref,       # (NT, H)        VMEM block (token-type table)
                           gamma_ref,      # (1, H)
                           beta_ref,       # (1, H)
                           out_ref,        # (1, Tt, H)
                           wbuf,           # VMEM (Tt, H) scratch: gathered word rows
                           sem):           # DMA semaphore (1,)
    t = pl.program_id(0)
    b = pl.program_id(1)
    Tt, H = wbuf.shape
    V = word_hbm.shape[0]
    NT = type_ref.shape[0]
    base = t * Tt

    # Static unroll factor for the DMA issue/wait loops (Tt is a Python int).
    unroll = 1
    for cand in (8, 4, 2):
        if Tt % cand == 0:
            unroll = cand
            break

    # ---- 1) issue all word-row gathers (HBM -> VMEM); copies overlap in flight ----
    @pl.loop(0, Tt, step=unroll)
    def _start(j0):
        for u in range(unroll):
            j = j0 + u
            row = ids_smem[b, base + j]
            # Clamp out-of-vocab ids (documented contract; avoids an OOB HBM DMA).
            row = jnp.minimum(jnp.maximum(row, 0), V - 1)
            pltpu.make_async_copy(word_hbm.at[pl.ds(row, 1), :],
                                  wbuf.at[pl.ds(j, 1), :],
                                  sem.at[0]).start()

    # ---- 2) while DMAs are in flight: token-type lookup (VPU selects) + positions ----
    type_tab = type_ref[...].astype(jnp.float32)             # (NT, H)
    tt_col = tt_ref[0]                                        # (Tt, 1) int32
    type_emb = jnp.broadcast_to(type_tab[0:1, :], (Tt, H))    # default to row 0
    for k in range(1, NT):                                    # NT is tiny (2 for BERT)
        type_emb = jnp.where(tt_col == k, type_tab[k:k + 1, :], type_emb)
    partial = pos_ref[...].astype(jnp.float32) + type_emb     # (Tt, H)

    # ---- 3) wait for all gathers (each wait retires one row-sized copy) ----
    @pl.loop(0, Tt, step=unroll)
    def _wait(j0):
        for _ in range(unroll):
            pltpu.make_async_copy(word_hbm.at[pl.ds(0, 1), :],
                                  wbuf.at[pl.ds(0, 1), :],
                                  sem.at[0]).wait()

    x = wbuf[...].astype(jnp.float32) + partial               # (Tt, H)

    # ---- 4) fused LayerNorm with single-pass statistics ----
    inv_h = 1.0 / H
    s = jnp.sum(x, axis=-1, keepdims=True)
    ss = jnp.sum(x * x, axis=-1, keepdims=True)
    mean = s * inv_h
    var = ss * inv_h - mean * mean
    x_hat = (x - mean) * jax.lax.rsqrt(var + LAYER_NORM_EPS)
    y = x_hat * gamma_ref[...].astype(jnp.float32) + beta_ref[...].astype(jnp.float32)

    # TODO(synk): nn.Dropout(p=0.1) from BertEmbeddings (module is in .train()) is treated
    # as identity for deterministic output.
    out_ref[0, :, :] = y.astype(out_ref.dtype)


def _pick_token_tile(T):
    if T <= 512:
        return T
    for cand in (512, 256, 128, 64, 32, 16, 8):
        if T % cand == 0:
            return cand
    return T


def bert_text_embedding(input_ids, token_type_ids, params, *, token_tile=None):
    """Pallas-call wrapper: returns [B, T, H] text embedding (float32)."""
    B, T = input_ids.shape
    V, H = params["word"].shape
    NT = params["type"].shape[0]
    Tt = token_tile if token_tile is not None else _pick_token_tile(T)
    assert T % Tt == 0, "sequence length must be divisible by the token tile"
    n_t = T // Tt

    ids = input_ids.astype(jnp.int32)
    pos_slice = params["pos"][:T]                              # (T, H)  static slice
    tt_col = token_type_ids.astype(jnp.int32)[:, :, None]      # (B, T, 1): tokens on sublanes

    # Output kept in float32 to bit-match the torch embedding layer; switch the
    # out_shape dtype to bfloat16 to halve HBM write traffic where acceptable.
    return pl.pallas_call(
        _text_embedding_kernel,
        out_shape=jax.ShapeDtypeStruct((B, T, H), jnp.float32),
        grid_spec=pltpu.PrefetchScalarGridSpec(
            num_scalar_prefetch=1,                             # input_ids -> SMEM
            grid=(n_t, B),            # token tile OUTER, batch INNER: pos tile stays resident
            in_specs=[
                pl.BlockSpec(memory_space=pl.ANY),                        # word table stays in HBM
                pl.BlockSpec((Tt, H), lambda t, b, ids: (t, 0)),          # position rows
                pl.BlockSpec((1, Tt, 1), lambda t, b, ids: (b, t, 0)),    # token-type id column
                pl.BlockSpec((NT, H), lambda t, b, ids: (0, 0)),          # token-type table (tiny)
                pl.BlockSpec((1, H), lambda t, b, ids: (0, 0)),           # LayerNorm gamma
                pl.BlockSpec((1, H), lambda t, b, ids: (0, 0)),           # LayerNorm beta
            ],
            out_specs=pl.BlockSpec((1, Tt, H), lambda t, b, ids: (b, t, 0)),
            scratch_shapes=[
                pltpu.VMEM((Tt, H), params["word"].dtype),     # gathered word rows
                pltpu.SemaphoreType.DMA((1,)),
            ],
        ),
        compiler_params=pltpu.CompilerParams(
            dimension_semantics=("parallel", "parallel"),
        ),
    )(ids, params["word"], pos_slice, tt_col, params["type"],
      params["gamma"], params["beta"])


def visual_dialog_embedding_forward(params, input_ids, image_feat, image_loc,
                                    sep_indices=None, sep_len=None,
                                    token_type_ids=None, attention_mask=None,
                                    image_attention_mask=None):
    """Mirrors VisualDialogEmbedding.forward: returns a 1-tuple (text_embedding,)."""
    if token_type_ids is None:
        token_type_ids = jnp.zeros_like(input_ids)
    # TODO(synk): the full pretrained ViLBERT encoder stack (co-attention layers acting on
    # image_feat / image_loc) is not reproduced from a checkpoint; only the deterministic
    # BERT text-embedding layer (word + position + token-type + LayerNorm) is computed here.
    text_embedding = bert_text_embedding(input_ids, token_type_ids, params)
    return (text_embedding,)


def init_params(key, vocab_size, max_position, type_vocab, hidden):
    k1, k2, k3 = jax.random.split(key, 3)
    return {
        "word": 0.02 * jax.random.normal(k1, (vocab_size, hidden), jnp.float32),
        "pos": 0.02 * jax.random.normal(k2, (max_position, hidden), jnp.float32),
        "type": 0.02 * jax.random.normal(k3, (type_vocab, hidden), jnp.float32),
        "gamma": jnp.ones((1, hidden), jnp.float32),
        "beta": jnp.zeros((1, hidden), jnp.float32),
    }


def _reference_text_embedding(input_ids, token_type_ids, params):
    T = input_ids.shape[1]
    x = (params["word"][input_ids]
         + params["pos"][:T][None, :, :]
         + params["type"][token_type_ids])
    mean = jnp.mean(x, axis=-1, keepdims=True)
    var = jnp.mean((x - mean) ** 2, axis=-1, keepdims=True)
    return ((x - mean) * jax.lax.rsqrt(var + LAYER_NORM_EPS)
            * params["gamma"][0] + params["beta"][0])


if __name__ == "__main__":
    B, T, H = 2, 8, 32            # batch, sequence length, hidden size
    VOCAB, MAX_POS, NTYPE = 64, 16, 2
    NUM_REGIONS, IMG_FEAT_DIM, IMG_LOC_DIM = 4, 16, 5

    key = jax.random.PRNGKey(0)
    k_par, k_ids, k_tt, k_img, k_loc = jax.random.split(key, 5)

    params = init_params(k_par, VOCAB, MAX_POS, NTYPE, H)
    input_ids = jax.random.randint(k_ids, (B, T), 0, VOCAB, dtype=jnp.int32)
    token_type_ids = jax.random.randint(k_tt, (B, T), 0, NTYPE, dtype=jnp.int32)
    image_feat = jax.random.normal(k_img, (B, NUM_REGIONS, IMG_FEAT_DIM), jnp.float32)
    image_loc = jax.random.normal(k_loc, (B, NUM_REGIONS, IMG_LOC_DIM), jnp.float32)

    (text_embedding,) = visual_dialog_embedding_forward(
        params, input_ids, image_feat, image_loc, token_type_ids=token_type_ids)
    text_embedding = jax.block_until_ready(text_embedding)

    ref = _reference_text_embedding(input_ids, token_type_ids, params)
    assert text_embedding.shape == (B, T, H)
    assert jnp.allclose(text_embedding, ref, atol=1e-5, rtol=1e-5)

    print("KERNEL_OK")
</pallas_src>

<mosaic_0001>
module attributes {stable_mosaic.version = 11 : i64} {
  func.func @_text_embedding_kernel(%arg0: i32, %arg1: i32, %arg2: memref<2x8xi32, #tpu.memory_space<smem>>, %arg3: memref<64x32xf32, #tpu.memory_space<any>>, %arg4: memref<8x32xf32, #tpu.memory_space<vmem>>, %arg5: memref<1x8x1xi32, #tpu.memory_space<vmem>>, %arg6: memref<2x32xf32, #tpu.memory_space<vmem>>, %arg7: memref<1x32xf32, #tpu.memory_space<vmem>>, %arg8: memref<1x32xf32, #tpu.memory_space<vmem>>, %arg9: memref<1x8x32xf32, #tpu.memory_space<vmem>>, %arg10: memref<8x32xf32, #tpu.memory_space<vmem>>, %arg11: memref<1x!tpu.dma_semaphore, #tpu.memory_space<semaphore_mem>>) attributes {dimension_semantics = [#tpu.dimension_semantics<parallel>, #tpu.dimension_semantics<parallel>], iteration_bounds = array<i64: 1, 2>, scalar_prefetch = 1 : i64, scratch_operands = 2 : i64, tpu.core_type = #tpu.core_type<tc>, window_params = [{}, {transform_indices = @transform_1, window_bounds = array<i64: 8, 32>}, {transform_indices = @transform_2, window_bounds = array<i64: 1, 8, 1>}, {pipeline_mode = #tpu.pipeline_mode<synchronous>, transform_indices = @transform_3, window_bounds = array<i64: 2, 32>}, {pipeline_mode = #tpu.pipeline_mode<synchronous>, transform_indices = @transform_4, window_bounds = array<i64: 1, 32>}, {pipeline_mode = #tpu.pipeline_mode<synchronous>, transform_indices = @transform_5, window_bounds = array<i64: 1, 32>}, {transform_indices = @transform_6, window_bounds = array<i64: 1, 8, 32>}]} {
    %c8_i32 = arith.constant 8 : i32
    %0 = arith.muli %arg0, %c8_i32 : i32
    %c0_i32 = arith.constant 0 : i32
    %c8_i32_0 = arith.constant 8 : i32
    %1 = arith.muli %c0_i32, %c8_i32_0 : i32
    %c0_i32_1 = arith.constant 0 : i32
    %2 = arith.addi %c0_i32_1, %1 : i32
    %c0_i32_2 = arith.constant 0 : i32
    %3 = arith.addi %2, %c0_i32_2 : i32
    %4 = arith.addi %0, %3 : i32
    %5 = arith.index_cast %arg1 : i32 to index
    %6 = arith.index_cast %4 : i32 to index
    %7 = memref.load %arg2[%5, %6] : memref<2x8xi32, #tpu.memory_space<smem>>
    %c0_i32_3 = arith.constant 0 : i32
    %8 = arith.maxsi %7, %c0_i32_3 : i32
    %c63_i32 = arith.constant 63 : i32
    %9 = arith.minsi %8, %c63_i32 : i32
    %c0_i32_4 = arith.constant 0 : i32
    %c0_i32_5 = arith.constant 0 : i32
    %10 = tpu.memref_slice %arg3[%9, %c0_i32_5] : memref<64x32xf32, #tpu.memory_space<any>> -> memref<1x32xf32, #tpu.memory_space<any>>
    %c0_i32_6 = arith.constant 0 : i32
    %11 = tpu.memref_slice %arg10[%3, %c0_i32_6] : memref<8x32xf32, #tpu.memory_space<vmem>> -> memref<1x32xf32, #tpu.memory_space<vmem>>
    %12 = tpu.memref_slice %arg11[%c0_i32_4] : memref<1x!tpu.dma_semaphore, #tpu.memory_space<semaphore_mem>> -> memref<1x!tpu.dma_semaphore, #tpu.memory_space<semaphore_mem>>
    %13 = tpu.memref_squeeze %12 : memref<1x!tpu.dma_semaphore, #tpu.memory_space<semaphore_mem>> -> memref<!tpu.dma_semaphore, #tpu.memory_space<semaphore_mem>>
    tpu.enqueue_dma source(%10 : memref<1x32xf32, #tpu.memory_space<any>>) target(%11 : memref<1x32xf32, #tpu.memory_space<vmem>>) target_semaphore(%13 : memref<!tpu.dma_semaphore, #tpu.memory_space<semaphore_mem>>)
    %c1_i32 = arith.constant 1 : i32
    %14 = arith.addi %2, %c1_i32 : i32
    %15 = arith.addi %0, %14 : i32
    %16 = arith.index_cast %arg1 : i32 to index
    %17 = arith.index_cast %15 : i32 to index
    %18 = memref.load %arg2[%16, %17] : memref<2x8xi32, #tpu.memory_space<smem>>
    %c0_i32_7 = arith.constant 0 : i32
    %19 = arith.maxsi %18, %c0_i32_7 : i32
    %c63_i32_8 = arith.constant 63 : i32
    %20 = arith.minsi %19, %c63_i32_8 : i32
    %c0_i32_9 = arith.constant 0 : i32
    %c0_i32_10 = arith.constant 0 : i32
    %21 = tpu.memref_slice %arg3[%20, %c0_i32_10] : memref<64x32xf32, #tpu.memory_space<any>> -> memref<1x32xf32, #tpu.memory_space<any>>
    %c0_i32_11 = arith.constant 0 : i32
    %22 = tpu.memref_slice %arg10[%14, %c0_i32_11] : memref<8x32xf32, #tpu.memory_space<vmem>> -> memref<1x32xf32, #tpu.memory_space<vmem>>
    %23 = tpu.memref_slice %arg11[%c0_i32_9] : memref<1x!tpu.dma_semaphore, #tpu.memory_space<semaphore_mem>> -> memref<1x!tpu.dma_semaphore, #tpu.memory_space<semaphore_mem>>
    %24 = tpu.memref_squeeze %23 : memref<1x!tpu.dma_semaphore, #tpu.memory_space<semaphore_mem>> -> memref<!tpu.dma_semaphore, #tpu.memory_space<semaphore_mem>>
    tpu.enqueue_dma source(%21 : memref<1x32xf32, #tpu.memory_space<any>>) target(%22 : memref<1x32xf32, #tpu.memory_space<vmem>>) target_semaphore(%24 : memref<!tpu.dma_semaphore, #tpu.memory_space<semaphore_mem>>)
    %c2_i32 = arith.constant 2 : i32
    %25 = arith.addi %2, %c2_i32 : i32
    %26 = arith.addi %0, %25 : i32
    %27 = arith.index_cast %arg1 : i32 to index
    %28 = arith.index_cast %26 : i32 to index
    %29 = memref.load %arg2[%27, %28] : memref<2x8xi32, #tpu.memory_space<smem>>
    %c0_i32_12 = arith.constant 0 : i32
    %30 = arith.maxsi %29, %c0_i32_12 : i32
    %c63_i32_13 = arith.constant 63 : i32
    %31 = arith.minsi %30, %c63_i32_13 : i32
    %c0_i32_14 = arith.constant 0 : i32
    %c0_i32_15 = arith.constant 0 : i32
    %32 = tpu.memref_slice %arg3[%31, %c0_i32_15] : memref<64x32xf32, #tpu.memory_space<any>> -> memref<1x32xf32, #tpu.memory_space<any>>
    %c0_i32_16 = arith.constant 0 : i32
    %33 = tpu.memref_slice %arg10[%25, %c0_i32_16] : memref<8x32xf32, #tpu.memory_space<vmem>> -> memref<1x32xf32, #tpu.memory_space<vmem>>
    %34 = tpu.memref_slice %arg11[%c0_i32_14] : memref<1x!tpu.dma_semaphore, #tpu.memory_space<semaphore_mem>> -> memref<1x!tpu.dma_semaphore, #tpu.memory_space<semaphore_mem>>
    %35 = tpu.memref_squeeze %34 : memref<1x!tpu.dma_semaphore, #tpu.memory_space<semaphore_mem>> -> memref<!tpu.dma_semaphore, #tpu.memory_space<semaphore_mem>>
    tpu.enqueue_dma source(%32 : memref<1x32xf32, #tpu.memory_space<any>>) target(%33 : memref<1x32xf32, #tpu.memory_space<vmem>>) target_semaphore(%35 : memref<!tpu.dma_semaphore, #tpu.memory_space<semaphore_mem>>)
    %c3_i32 = arith.constant 3 : i32
    %36 = arith.addi %2, %c3_i32 : i32
    %37 = arith.addi %0, %36 : i32
    %38 = arith.index_cast %arg1 : i32 to index
    %39 = arith.index_cast %37 : i32 to index
    %40 = memref.load %arg2[%38, %39] : memref<2x8xi32, #tpu.memory_space<smem>>
    %c0_i32_17 = arith.constant 0 : i32
    %41 = arith.maxsi %40, %c0_i32_17 : i32
    %c63_i32_18 = arith.constant 63 : i32
    %42 = arith.minsi %41, %c63_i32_18 : i32
    %c0_i32_19 = arith.constant 0 : i32
    %c0_i32_20 = arith.constant 0 : i32
    %43 = tpu.memref_slice %arg3[%42, %c0_i32_20] : memref<64x32xf32, #tpu.memory_space<any>> -> memref<1x32xf32, #tpu.memory_space<any>>
    %c0_i32_21 = arith.constant 0 : i32
    %44 = tpu.memref_slice %arg10[%36, %c0_i32_21] : memref<8x32xf32, #tpu.memory_space<vmem>> -> memref<1x32xf32, #tpu.memory_space<vmem>>
    %45 = tpu.memref_slice %arg11[%c0_i32_19] : memref<1x!tpu.dma_semaphore, #tpu.memory_space<semaphore_mem>> -> memref<1x!tpu.dma_semaphore, #tpu.memory_space<semaphore_mem>>
    %46 = tpu.memref_squeeze %45 : memref<1x!tpu.dma_semaphore, #tpu.memory_space<semaphore_mem>> -> memref<!tpu.dma_semaphore, #tpu.memory_space<semaphore_mem>>
    tpu.enqueue_dma source(%43 : memref<1x32xf32, #tpu.memory_space<any>>) target(%44 : memref<1x32xf32, #tpu.memory_space<vmem>>) target_semaphore(%46 : memref<!tpu.dma_semaphore, #tpu.memory_space<semaphore_mem>>)
    %c4_i32 = arith.constant 4 : i32
    %47 = arith.addi %2, %c4_i32 : i32
    %48 = arith.addi %0, %47 : i32
    %49 = arith.index_cast %arg1 : i32 to index
    %50 = arith.index_cast %48 : i32 to index
    %51 = memref.load %arg2[%49, %50] : memref<2x8xi32, #tpu.memory_space<smem>>
    %c0_i32_22 = arith.constant 0 : i32
    %52 = arith.maxsi %51, %c0_i32_22 : i32
    %c63_i32_23 = arith.constant 63 : i32
    %53 = arith.minsi %52, %c63_i32_23 : i32
    %c0_i32_24 = arith.constant 0 : i32
    %c0_i32_25 = arith.constant 0 : i32
    %54 = tpu.memref_slice %arg3[%53, %c0_i32_25] : memref<64x32xf32, #tpu.memory_space<any>> -> memref<1x32xf32, #tpu.memory_space<any>>
    %c0_i32_26 = arith.constant 0 : i32
    %55 = tpu.memref_slice %arg10[%47, %c0_i32_26] : memref<8x32xf32, #tpu.memory_space<vmem>> -> memref<1x32xf32, #tpu.memory_space<vmem>>
    %56 = tpu.memref_slice %arg11[%c0_i32_24] : memref<1x!tpu.dma_semaphore, #tpu.memory_space<semaphore_mem>> -> memref<1x!tpu.dma_semaphore, #tpu.memory_space<semaphore_mem>>
    %57 = tpu.memref_squeeze %56 : memref<1x!tpu.dma_semaphore, #tpu.memory_space<semaphore_mem>> -> memref<!tpu.dma_semaphore, #tpu.memory_space<semaphore_mem>>
    tpu.enqueue_dma source(%54 : memref<1x32xf32, #tpu.memory_space<any>>) target(%55 : memref<1x32xf32, #tpu.memory_space<vmem>>) target_semaphore(%57 : memref<!tpu.dma_semaphore, #tpu.memory_space<semaphore_mem>>)
    %c5_i32 = arith.constant 5 : i32
    %58 = arith.addi %2, %c5_i32 : i32
    %59 = arith.addi %0, %58 : i32
    %60 = arith.index_cast %arg1 : i32 to index
    %61 = arith.index_cast %59 : i32 to index
    %62 = memref.load %arg2[%60, %61] : memref<2x8xi32, #tpu.memory_space<smem>>
    %c0_i32_27 = arith.constant 0 : i32
    %63 = arith.maxsi %62, %c0_i32_27 : i32
    %c63_i32_28 = arith.constant 63 : i32
    %64 = arith.minsi %63, %c63_i32_28 : i32
    %c0_i32_29 = arith.constant 0 : i32
    %c0_i32_30 = arith.constant 0 : i32
    %65 = tpu.memref_slice %arg3[%64, %c0_i32_30] : memref<64x32xf32, #tpu.memory_space<any>> -> memref<1x32xf32, #tpu.memory_space<any>>
    %c0_i32_31 = arith.constant 0 : i32
    %66 = tpu.memref_slice %arg10[%58, %c0_i32_31] : memref<8x32xf32, #tpu.memory_space<vmem>> -> memref<1x32xf32, #tpu.memory_space<vmem>>
    %67 = tpu.memref_slice %arg11[%c0_i32_29] : memref<1x!tpu.dma_semaphore, #tpu.memory_space<semaphore_mem>> -> memref<1x!tpu.dma_semaphore, #tpu.memory_space<semaphore_mem>>
    %68 = tpu.memref_squeeze %67 : memref<1x!tpu.dma_semaphore, #tpu.memory_space<semaphore_mem>> -> memref<!tpu.dma_semaphore, #tpu.memory_space<semaphore_mem>>
    tpu.enqueue_dma source(%65 : memref<1x32xf32, #tpu.memory_space<any>>) target(%66 : memref<1x32xf32, #tpu.memory_space<vmem>>) target_semaphore(%68 : memref<!tpu.dma_semaphore, #tpu.memory_space<semaphore_mem>>)
    %c6_i32 = arith.constant 6 : i32
    %69 = arith.addi %2, %c6_i32 : i32
    %70 = arith.addi %0, %69 : i32
    %71 = arith.index_cast %arg1 : i32 to index
    %72 = arith.index_cast %70 : i32 to index
    %73 = memref.load %arg2[%71, %72] : memref<2x8xi32, #tpu.memory_space<smem>>
    %c0_i32_32 = arith.constant 0 : i32
    %74 = arith.maxsi %73, %c0_i32_32 : i32
    %c63_i32_33 = arith.constant 63 : i32
    %75 = arith.minsi %74, %c63_i32_33 : i32
    %c0_i32_34 = arith.constant 0 : i32
    %c0_i32_35 = arith.constant 0 : i32
    %76 = tpu.memref_slice %arg3[%75, %c0_i32_35] : memref<64x32xf32, #tpu.memory_space<any>> -> memref<1x32xf32, #tpu.memory_space<any>>
    %c0_i32_36 = arith.constant 0 : i32
    %77 = tpu.memref_slice %arg10[%69, %c0_i32_36] : memref<8x32xf32, #tpu.memory_space<vmem>> -> memref<1x32xf32, #tpu.memory_space<vmem>>
    %78 = tpu.memref_slice %arg11[%c0_i32_34] : memref<1x!tpu.dma_semaphore, #tpu.memory_space<semaphore_mem>> -> memref<1x!tpu.dma_semaphore, #tpu.memory_space<semaphore_mem>>
    %79 = tpu.memref_squeeze %78 : memref<1x!tpu.dma_semaphore, #tpu.memory_space<semaphore_mem>> -> memref<!tpu.dma_semaphore, #tpu.memory_space<semaphore_mem>>
    tpu.enqueue_dma source(%76 : memref<1x32xf32, #tpu.memory_space<any>>) target(%77 : memref<1x32xf32, #tpu.memory_space<vmem>>) target_semaphore(%79 : memref<!tpu.dma_semaphore, #tpu.memory_space<semaphore_mem>>)
    %c7_i32 = arith.constant 7 : i32
    %80 = arith.addi %2, %c7_i32 : i32
    %81 = arith.addi %0, %80 : i32
    %82 = arith.index_cast %arg1 : i32 to index
    %83 = arith.index_cast %81 : i32 to index
    %84 = memref.load %arg2[%82, %83] : memref<2x8xi32, #tpu.memory_space<smem>>
    %c0_i32_37 = arith.constant 0 : i32
    %85 = arith.maxsi %84, %c0_i32_37 : i32
    %c63_i32_38 = arith.constant 63 : i32
    %86 = arith.minsi %85, %c63_i32_38 : i32
    %c0_i32_39 = arith.constant 0 : i32
    %c0_i32_40 = arith.constant 0 : i32
    %87 = tpu.memref_slice %arg3[%86, %c0_i32_40] : memref<64x32xf32, #tpu.memory_space<any>> -> memref<1x32xf32, #tpu.memory_space<any>>
    %c0_i32_41 = arith.constant 0 : i32
    %88 = tpu.memref_slice %arg10[%80, %c0_i32_41] : memref<8x32xf32, #tpu.memory_space<vmem>> -> memref<1x32xf32, #tpu.memory_space<vmem>>
    %89 = tpu.memref_slice %arg11[%c0_i32_39] : memref<1x!tpu.dma_semaphore, #tpu.memory_space<semaphore_mem>> -> memref<1x!tpu.dma_semaphore, #tpu.memory_space<semaphore_mem>>
    %90 = tpu.memref_squeeze %89 : memref<1x!tpu.dma_semaphore, #tpu.memory_space<semaphore_mem>> -> memref<!tpu.dma_semaphore, #tpu.memory_space<semaphore_mem>>
    tpu.enqueue_dma source(%87 : memref<1x32xf32, #tpu.memory_space<any>>) target(%88 : memref<1x32xf32, #tpu.memory_space<vmem>>) target_semaphore(%90 : memref<!tpu.dma_semaphore, #tpu.memory_space<semaphore_mem>>)
    %c1_i32_42 = arith.constant 1 : i32
    %c0 = arith.constant 0 : index
    %c0_43 = arith.constant 0 : index
    %91 = vector.load %arg6[%c0, %c0_43] : memref<2x32xf32, #tpu.memory_space<vmem>>, vector<2x32xf32>
    %c0_44 = arith.constant 0 : index
    %c0_45 = arith.constant 0 : index
    %c0_46 = arith.constant 0 : index
    %92 = vector.load %arg5[%c0_44, %c0_45, %c0_46] : memref<1x8x1xi32, #tpu.memory_space<vmem>>, vector<1x8x1xi32>
    %93 = vector.shape_cast %92 : vector<1x8x1xi32> to vector<8x1xi32>
    %94 = vector.extract_strided_slice %91 {offsets = [0, 0], sizes = [1, 32], strides = [1, 1]} : vector<2x32xf32> to vector<1x32xf32>
    %95 = vector.shape_cast %94 : vector<1x32xf32> to vector<1x32xf32>
    %96 = vector.broadcast %95 : vector<1x32xf32> to vector<8x32xf32>
    %c1_i32_47 = arith.constant 1 : i32
    %97 = vector.broadcast %c1_i32_47 : i32 to vector<8x1xi32>
    %98 = arith.cmpi eq, %93, %97 : vector<8x1xi32>
    %99 = vector.extract_strided_slice %91 {offsets = [1, 0], sizes = [1, 32], strides = [1, 1]} : vector<2x32xf32> to vector<1x32xf32>
    %100 = vector.shape_cast %98 : vector<8x1xi1> to vector<8x1xi1>
    %101 = vector.broadcast %100 : vector<8x1xi1> to vector<8x32xi1>
    %102 = vector.shape_cast %99 : vector<1x32xf32> to vector<1x32xf32>
    %103 = vector.broadcast %102 : vector<1x32xf32> to vector<8x32xf32>
    %104 = arith.select %101, %103, %96 : vector<8x32xi1>, vector<8x32xf32>
    %c0_48 = arith.constant 0 : index
    %c0_49 = arith.constant 0 : index
    %105 = vector.load %arg4[%c0_48, %c0_49] : memref<8x32xf32, #tpu.memory_space<vmem>>, vector<8x32xf32>
    %106 = arith.addf %105, %104 : vector<8x32xf32>
    %c0_i32_50 = arith.constant 0 : i32
    %c0_i32_51 = arith.constant 0 : i32
    %c0_i32_52 = arith.constant 0 : i32
    %c0_i32_53 = arith.constant 0 : i32
    %107 = tpu.memref_slice %arg3[%c0_i32_52, %c0_i32_53] : memref<64x32xf32, #tpu.memory_space<any>> -> memref<1x32xf32, #tpu.memory_space<any>>
    %c0_i32_54 = arith.constant 0 : i32
    %c0_i32_55 = arith.constant 0 : i32
    %108 = tpu.memref_slice %arg10[%c0_i32_54, %c0_i32_55] : memref<8x32xf32, #tpu.memory_space<vmem>> -> memref<1x32xf32, #tpu.memory_space<vmem>>
    %109 = tpu.memref_slice %arg11[%c0_i32_51] : memref<1x!tpu.dma_semaphore, #tpu.memory_space<semaphore_mem>> -> memref<1x!tpu.dma_semaphore, #tpu.memory_space<semaphore_mem>>
    %110 = tpu.memref_squeeze %109 : memref<1x!tpu.dma_semaphore, #tpu.memory_space<semaphore_mem>> -> memref<!tpu.dma_semaphore, #tpu.memory_space<semaphore_mem>>
    tpu.wait_dma2 semaphore(%110 : memref<!tpu.dma_semaphore, #tpu.memory_space<semaphore_mem>>) src(%107 : memref<1x32xf32, #tpu.memory_space<any>>) dst(%108 : memref<1x32xf32, #tpu.memory_space<vmem>>)
    %c0_i32_56 = arith.constant 0 : i32
    %c0_i32_57 = arith.constant 0 : i32
    %c0_i32_58 = arith.constant 0 : i32
    %111 = tpu.memref_slice %arg3[%c0_i32_57, %c0_i32_58] : memref<64x32xf32, #tpu.memory_space<any>> -> memref<1x32xf32, #tpu.memory_space<any>>
    %c0_i32_59 = arith.constant 0 : i32
    %c0_i32_60 = arith.constant 0 : i32
    %112 = tpu.memref_slice %arg10[%c0_i32_59, %c0_i32_60] : memref<8x32xf32, #tpu.memory_space<vmem>> -> memref<1x32xf32, #tpu.memory_space<vmem>>
    %113 = tpu.memref_slice %arg11[%c0_i32_56] : memref<1x!tpu.dma_semaphore, #tpu.memory_space<semaphore_mem>> -> memref<1x!tpu.dma_semaphore, #tpu.memory_space<semaphore_mem>>
    %114 = tpu.memref_squeeze %113 : memref<1x!tpu.dma_semaphore, #tpu.memory_space<semaphore_mem>> -> memref<!tpu.dma_semaphore, #tpu.memory_space<semaphore_mem>>
    tpu.wait_dma2 semaphore(%114 : memref<!tpu.dma_semaphore, #tpu.memory_space<semaphore_mem>>) src(%111 : memref<1x32xf32, #tpu.memory_space<any>>) dst(%112 : memref<1x32xf32, #tpu.memory_space<vmem>>)
    %c0_i32_61 = arith.constant 0 : i32
    %c0_i32_62 = arith.constant 0 : i32
    %c0_i32_63 = arith.constant 0 : i32
    %115 = tpu.memref_slice %arg3[%c0_i32_62, %c0_i32_63] : memref<64x32xf32, #tpu.memory_space<any>> -> memref<1x32xf32, #tpu.memory_space<any>>
    %c0_i32_64 = arith.constant 0 : i32
    %c0_i32_65 = arith.constant 0 : i32
    %116 = tpu.memref_slice %arg10[%c0_i32_64, %c0_i32_65] : memref<8x32xf32, #tpu.memory_space<vmem>> -> memref<1x32xf32, #tpu.memory_space<vmem>>
    %117 = tpu.memref_slice %arg11[%c0_i32_61] : memref<1x!tpu.dma_semaphore, #tpu.memory_space<semaphore_mem>> -> memref<1x!tpu.dma_semaphore, #tpu.memory_space<semaphore_mem>>
    %118 = tpu.memref_squeeze %117 : memref<1x!tpu.dma_semaphore, #tpu.memory_space<semaphore_mem>> -> memref<!tpu.dma_semaphore, #tpu.memory_space<semaphore_mem>>
    tpu.wait_dma2 semaphore(%118 : memref<!tpu.dma_semaphore, #tpu.memory_space<semaphore_mem>>) src(%115 : memref<1x32xf32, #tpu.memory_space<any>>) dst(%116 : memref<1x32xf32, #tpu.memory_space<vmem>>)
    %c0_i32_66 = arith.constant 0 : i32
    %c0_i32_67 = arith.constant 0 : i32
    %c0_i32_68 = arith.constant 0 : i32
    %119 = tpu.memref_slice %arg3[%c0_i32_67, %c0_i32_68] : memref<64x32xf32, #tpu.memory_space<any>> -> memref<1x32xf32, #tpu.memory_space<any>>
    %c0_i32_69 = arith.constant 0 : i32
    %c0_i32_70 = arith.constant 0 : i32
    %120 = tpu.memref_slice %arg10[%c0_i32_69, %c0_i32_70] : memref<8x32xf32, #tpu.memory_space<vmem>> -> memref<1x32xf32, #tpu.memory_space<vmem>>
    %121 = tpu.memref_slice %arg11[%c0_i32_66] : memref<1x!tpu.dma_semaphore, #tpu.memory_space<semaphore_mem>> -> memref<1x!tpu.dma_semaphore, #tpu.memory_space<semaphore_mem>>
    %122 = tpu.memref_squeeze %121 : memref<1x!tpu.dma_semaphore, #tpu.memory_space<semaphore_mem>> -> memref<!tpu.dma_semaphore, #tpu.memory_space<semaphore_mem>>
    tpu.wait_dma2 semaphore(%122 : memref<!tpu.dma_semaphore, #tpu.memory_space<semaphore_mem>>) src(%119 : memref<1x32xf32, #tpu.memory_space<any>>) dst(%120 : memref<1x32xf32, #tpu.memory_space<vmem>>)
    %c0_i32_71 = arith.constant 0 : i32
    %c0_i32_72 = arith.constant 0 : i32
    %c0_i32_73 = arith.constant 0 : i32
    %123 = tpu.memref_slice %arg3[%c0_i32_72, %c0_i32_73] : memref<64x32xf32, #tpu.memory_space<any>> -> memref<1x32xf32, #tpu.memory_space<any>>
    %c0_i32_74 = arith.constant 0 : i32
    %c0_i32_75 = arith.constant 0 : i32
    %124 = tpu.memref_slice %arg10[%c0_i32_74, %c0_i32_75] : memref<8x32xf32, #tpu.memory_space<vmem>> -> memref<1x32xf32, #tpu.memory_space<vmem>>
    %125 = tpu.memref_slice %arg11[%c0_i32_71] : memref<1x!tpu.dma_semaphore, #tpu.memory_space<semaphore_mem>> -> memref<1x!tpu.dma_semaphore, #tpu.memory_space<semaphore_mem>>
    %126 = tpu.memref_squeeze %125 : memref<1x!tpu.dma_semaphore, #tpu.memory_space<semaphore_mem>> -> memref<!tpu.dma_semaphore, #tpu.memory_space<semaphore_mem>>
    tpu.wait_dma2 semaphore(%126 : memref<!tpu.dma_semaphore, #tpu.memory_space<semaphore_mem>>) src(%123 : memref<1x32xf32, #tpu.memory_space<any>>) dst(%124 : memref<1x32xf32, #tpu.memory_space<vmem>>)
    %c0_i32_76 = arith.constant 0 : i32
    %c0_i32_77 = arith.constant 0 : i32
    %c0_i32_78 = arith.constant 0 : i32
    %127 = tpu.memref_slice %arg3[%c0_i32_77, %c0_i32_78] : memref<64x32xf32, #tpu.memory_space<any>> -> memref<1x32xf32, #tpu.memory_space<any>>
    %c0_i32_79 = arith.constant 0 : i32
    %c0_i32_80 = arith.constant 0 : i32
    %128 = tpu.memref_slice %arg10[%c0_i32_79, %c0_i32_80] : memref<8x32xf32, #tpu.memory_space<vmem>> -> memref<1x32xf32, #tpu.memory_space<vmem>>
    %129 = tpu.memref_slice %arg11[%c0_i32_76] : memref<1x!tpu.dma_semaphore, #tpu.memory_space<semaphore_mem>> -> memref<1x!tpu.dma_semaphore, #tpu.memory_space<semaphore_mem>>
    %130 = tpu.memref_squeeze %129 : memref<1x!tpu.dma_semaphore, #tpu.memory_space<semaphore_mem>> -> memref<!tpu.dma_semaphore, #tpu.memory_space<semaphore_mem>>
    tpu.wait_dma2 semaphore(%130 : memref<!tpu.dma_semaphore, #tpu.memory_space<semaphore_mem>>) src(%127 : memref<1x32xf32, #tpu.memory_space<any>>) dst(%128 : memref<1x32xf32, #tpu.memory_space<vmem>>)
    %c0_i32_81 = arith.constant 0 : i32
    %c0_i32_82 = arith.constant 0 : i32
    %c0_i32_83 = arith.constant 0 : i32
    %131 = tpu.memref_slice %arg3[%c0_i32_82, %c0_i32_83] : memref<64x32xf32, #tpu.memory_space<any>> -> memref<1x32xf32, #tpu.memory_space<any>>
    %c0_i32_84 = arith.constant 0 : i32
    %c0_i32_85 = arith.constant 0 : i32
    %132 = tpu.memref_slice %arg10[%c0_i32_84, %c0_i32_85] : memref<8x32xf32, #tpu.memory_space<vmem>> -> memref<1x32xf32, #tpu.memory_space<vmem>>
    %133 = tpu.memref_slice %arg11[%c0_i32_81] : memref<1x!tpu.dma_semaphore, #tpu.memory_space<semaphore_mem>> -> memref<1x!tpu.dma_semaphore, #tpu.memory_space<semaphore_mem>>
    %134 = tpu.memref_squeeze %133 : memref<1x!tpu.dma_semaphore, #tpu.memory_space<semaphore_mem>> -> memref<!tpu.dma_semaphore, #tpu.memory_space<semaphore_mem>>
    tpu.wait_dma2 semaphore(%134 : memref<!tpu.dma_semaphore, #tpu.memory_space<semaphore_mem>>) src(%131 : memref<1x32xf32, #tpu.memory_space<any>>) dst(%132 : memref<1x32xf32, #tpu.memory_space<vmem>>)
    %c0_i32_86 = arith.constant 0 : i32
    %c0_i32_87 = arith.constant 0 : i32
    %c0_i32_88 = arith.constant 0 : i32
    %135 = tpu.memref_slice %arg3[%c0_i32_87, %c0_i32_88] : memref<64x32xf32, #tpu.memory_space<any>> -> memref<1x32xf32, #tpu.memory_space<any>>
    %c0_i32_89 = arith.constant 0 : i32
    %c0_i32_90 = arith.constant 0 : i32
    %136 = tpu.memref_slice %arg10[%c0_i32_89, %c0_i32_90] : memref<8x32xf32, #tpu.memory_space<vmem>> -> memref<1x32xf32, #tpu.memory_space<vmem>>
    %137 = tpu.memref_slice %arg11[%c0_i32_86] : memref<1x!tpu.dma_semaphore, #tpu.memory_space<semaphore_mem>> -> memref<1x!tpu.dma_semaphore, #tpu.memory_space<semaphore_mem>>
    %138 = tpu.memref_squeeze %137 : memref<1x!tpu.dma_semaphore, #tpu.memory_space<semaphore_mem>> -> memref<!tpu.dma_semaphore, #tpu.memory_space<semaphore_mem>>
    tpu.wait_dma2 semaphore(%138 : memref<!tpu.dma_semaphore, #tpu.memory_space<semaphore_mem>>) src(%135 : memref<1x32xf32, #tpu.memory_space<any>>) dst(%136 : memref<1x32xf32, #tpu.memory_space<vmem>>)
    %c0_91 = arith.constant 0 : index
    %c0_92 = arith.constant 0 : index
    %139 = vector.load %arg10[%c0_91, %c0_92] : memref<8x32xf32, #tpu.memory_space<vmem>>, vector<8x32xf32>
    %140 = arith.addf %139, %106 : vector<8x32xf32>
    %cst = arith.constant dense<0.000000e+00> : vector<8xf32>
    %141 = vector.multi_reduction <add>, %140, %cst [1] : vector<8x32xf32> to vector<8xf32>
    %142 = vector.shape_cast %141 : vector<8xf32> to vector<8x1xf32>
    %143 = arith.mulf %140, %140 : vector<8x32xf32>
    %cst_93 = arith.constant dense<0.000000e+00> : vector<8xf32>
    %144 = vector.multi_reduction <add>, %143, %cst_93 [1] : vector<8x32xf32> to vector<8xf32>
    %145 = vector.shape_cast %144 : vector<8xf32> to vector<8x1xf32>
    %cst_94 = arith.constant 3.125000e-02 : f32
    %146 = vector.broadcast %cst_94 : f32 to vector<8x1xf32>
    %147 = arith.mulf %142, %146 : vector<8x1xf32>
    %cst_95 = arith.constant 3.125000e-02 : f32
    %148 = vector.broadcast %cst_95 : f32 to vector<8x1xf32>
    %149 = arith.mulf %145, %148 : vector<8x1xf32>
    %150 = arith.mulf %147, %147 : vector<8x1xf32>
    %151 = arith.subf %149, %150 : vector<8x1xf32>
    %152 = vector.broadcast %147 : vector<8x1xf32> to vector<8x32xf32>
    %153 = arith.subf %140, %152 : vector<8x32xf32>
    %cst_96 = arith.constant 9.99999996E-13 : f32
    %154 = vector.broadcast %cst_96 : f32 to vector<8x1xf32>
    %155 = arith.addf %151, %154 : vector<8x1xf32>
    %156 = math.rsqrt %155 : vector<8x1xf32>
    %157 = vector.broadcast %156 : vector<8x1xf32> to vector<8x32xf32>
    %158 = arith.mulf %153, %157 : vector<8x32xf32>
    %c0_97 = arith.constant 0 : index
    %c0_98 = arith.constant 0 : index
    %159 = vector.load %arg7[%c0_97, %c0_98] : memref<1x32xf32, #tpu.memory_space<vmem>>, vector<1x32xf32>
    %160 = vector.broadcast %159 : vector<1x32xf32> to vector<8x32xf32>
    %161 = arith.mulf %158, %160 : vector<8x32xf32>
    %c0_99 = arith.constant 0 : index
    %c0_100 = arith.constant 0 : index
    %162 = vector.load %arg8[%c0_99, %c0_100] : memref<1x32xf32, #tpu.memory_space<vmem>>, vector<1x32xf32>
    %163 = vector.broadcast %162 : vector<1x32xf32> to vector<8x32xf32>
    %164 = arith.addf %161, %163 : vector<8x32xf32>
    %c0_101 = arith.constant 0 : index
    %c0_102 = arith.constant 0 : index
    %c0_103 = arith.constant 0 : index
    %165 = vector.load %arg9[%c0_101, %c0_102, %c0_103] : memref<1x8x32xf32, #tpu.memory_space<vmem>>, vector<1x8x32xf32>
    %166 = vector.shape_cast %165 : vector<1x8x32xf32> to vector<8x32xf32>
    %167 = vector.shape_cast %164 : vector<8x32xf32> to vector<1x8x32xf32>
    tpu.vector_store %arg9[%c0_101, %c0_102, %c0_103], %167 {strides = array<i32>} : memref<1x8x32xf32, #tpu.memory_space<vmem>>, vector<1x8x32xf32>,
    return
  }
  func.func @transform_1(%arg0: i32, %arg1: i32, %arg2: memref<2x8xi32, #tpu.memory_space<smem>>) -> (i32, i32) {
    %c0_i32 = arith.constant 0 : i32
    %c0_i32_0 = arith.constant 0 : i32
    return %arg0, %c0_i32 : i32, i32
  }
  func.func @transform_2(%arg0: i32, %arg1: i32, %arg2: memref<2x8xi32, #tpu.memory_space<smem>>) -> (i32, i32, i32) {
    %c0_i32 = arith.constant 0 : i32
    %c0_i32_0 = arith.constant 0 : i32
    return %arg1, %arg0, %c0_i32 : i32, i32, i32
  }
  func.func @transform_3(%arg0: i32, %arg1: i32, %arg2: memref<2x8xi32, #tpu.memory_space<smem>>) -> (i32, i32) {
    %c0_i32 = arith.constant 0 : i32
    %c0_i32_0 = arith.constant 0 : i32
    %c0_i32_1 = arith.constant 0 : i32
    return %c0_i32, %c0_i32_0 : i32, i32
  }
  func.func @transform_4(%arg0: i32, %arg1: i32, %arg2: memref<2x8xi32, #tpu.memory_space<smem>>) -> (i32, i32) {
    %c0_i32 = arith.constant 0 : i32
    %c0_i32_0 = arith.constant 0 : i32
    %c0_i32_1 = arith.constant 0 : i32
    return %c0_i32, %c0_i32_0 : i32, i32
  }
  func.func @transform_5(%arg0: i32, %arg1: i32, %arg2: memref<2x8xi32, #tpu.memory_space<smem>>) -> (i32, i32) {
    %c0_i32 = arith.constant 0 : i32
    %c0_i32_0 = arith.constant 0 : i32
    %c0_i32_1 = arith.constant 0 : i32
    return %c0_i32, %c0_i32_0 : i32, i32
  }
  func.func @transform_6(%arg0: i32, %arg1: i32, %arg2: memref<2x8xi32, #tpu.memory_space<smem>>) -> (i32, i32, i32) {
    %c0_i32 = arith.constant 0 : i32
    %c0_i32_0 = arith.constant 0 : i32
    return %arg1, %arg0, %c0_i32 : i32, i32, i32
  }
}

</mosaic_0001>

<bundles_post_ra>
// kernel: tpu_custom_call.1
= control target key start
LH: loop header
LB: loop body
LE: loop exit
PB: predicated region body
PF: predicated region fallthrough
CT: control target
= control target key end

     0   :  { %s1466_s0 = inlined_call_operand.vmem [shape: s32[2,8], index: 0, kind: input, shape index: {}]   ;;  %s1467_s1 = inlined_call_operand.vmem [shape: f32[64,32], index: 1, kind: input, shape index: {}]   ;;  %s1468_s2 = inlined_call_operand.vmem [shape: f32[8,32], index: 2, kind: input, shape index: {}]   ;;  %s1469_s3 = inlined_call_operand.vmem [shape: s32[2,8,1], index: 3, kind: input, shape index: {}]   ;;  %s1470_s4 = inlined_call_operand.vmem [shape: f32[2,32], index: 4, kind: input, shape index: {}]   ;;  %s1471_s5 = inlined_call_operand.vmem [shape: f32[1,32], index: 5, kind: input, shape index: {}]   ;;  %s1472_s6 = inlined_call_operand.vmem [shape: f32[1,32], index: 6, kind: input, shape index: {}]   ;;  %s1473_s7 = inlined_call_operand.hbm [shape: f32[2,8,32], index: 7, kind: output, shape index: {}]  }
   0x1   :  { %s12_s26 = sshll.u32 %s1466_s0, 4  ;;  %s13_s26 = int_to_ptr.vmem [resolvable:$true] %s12_s26 }
   0x2   :  { %s1153_s27 = scalar_lea.vmem %s13_s26, 32  ;;  %p1158_p1 = scmp.lt.s32.totalorder %s13_s26, %s13_s26 }
   0x3   :  { %p1154_p0 = scmp.ne.s32.totalorder %s13_s26, %s1153_s27  ;;  %p1159_p2 = scmp.lt.s32.totalorder %s1153_s27, %s1153_s27 }
   0x5   :  { %p1160_p3 = por %p1159_p2, %p1158_p1 }
   0x7   :  { %p1161_p4 = pnand %p1160_p3, %p1154_p0 }
   0x9   :  { %1164 = shalt.err (!%p1161_p4)  }
   0xa   :  { %s1249_s28 = smov [#allocation5]  }
   0xb   :  { %15 = dma.vmem_to_smem %s13_s26, 32, %s1249_s28, [#allocation4] }
   0xc   :  { %1217 = dma.done.wait [#allocation4], 32 }
   0xd   :  { %1218 = vsyncadd [#allocation4], 4294967264 }
   0xe   :  { %17 = sfence }
   0xf   :  { %18 = vsyncpa [#allocation7], 0 }
  0x10   :  { %20 = vsyncpa [#allocation7 + $0x1], 0  ;;  %s1295_s29 = smov 0   ;;  %s1297_s30 = smov 0  }
  0x11   :  { %s1299_s0 = smov 0   ;;  %s1301_s8 = smov 0  }
  0x12   :  { %s1303_s9 = smov 0   ;;  %s1305_s10 = smov 0  }
  0x13 LB: > { %s1014_s11 = sadd.s32 4294967295, %s1247_s10   ;;  %s1015_s12 = sadd.s32 4294967294, %s1247_s10   ;;  %s1247_s10 = sphi %s1305_s10, %s26_s10   ;;  %s1243_s9 = sphi %s1303_s9, %s1480_s9   ;;  %s1239_s8 = sphi %s1301_s8, %s1479_s8   ;;  %s1235_s0 = sphi %s1299_s0, %s1478_s0   ;;  %s1231_s30 = sphi %s1297_s30, %s1477_s30   ;;  %s1227_s29 = sphi %s1295_s29, %s1476_s29  }
  0x14   : > { %s35_s13 = sadd.s32 1, %s1243_s9  ;;  %s164_s14 = sadd.s32 1, %s1235_s0 }
  0x15   : > { %p36_p5 = scmp.ge.s32.totalorder %s35_s13, 2  ;;  %p174_p6 = scmp.ne.s32.totalorder %s1235_s0, %s1231_s30 }
  0x16   : > { %p175_p7 = scmp.eq.s32.totalorder %s1014_s11, 1  ;;  %p180_p8 = scmp.ne.s32.totalorder %s1231_s30, %s1227_s29 }
  0x17   : > { %s1482_s13 = smov (%p36_p5, %s35_s13), 0  ;;  %p181_p10 = scmp.eq.s32.totalorder %s1015_s12, 1 }
  0x18   : > { %p1333_p9 = por %p175_p7, %p174_p6  ;;  %s159_s16 = ssub.s32 %s1243_s9, %s1482_s13 }
  0x19   : > { %p1019_p11 = scmp.ge.s32.totalorder %s1247_s10, 1  ;;  %p162_p12 = scmp.eq.s32.totalorder %s159_s16, 0 }
  0x1a   : > { %p1340_p13 = por %p181_p10, %p180_p8  ;;  %p225_p0 = scmp.lt.s32.totalorder %s1247_s10, 3 }
  0x1b   : > { %s1346_s18 = scalar_select %p162_p12, %s1235_s0, %s164_s14  }
  0x1c   : > { %p226_p1 = pnand %p1019_p11, %p225_p0 }
  0x1d   : > { %s256_s19 = sand.u32 (!%p226_p1), 1, %s1231_s30   ;;  %p263_p2 = scmp.lt.s32.totalorder (!%p226_p1), %s1239_s8, 1 }
  0x1e   : > { %229 = sbr.rel (%p226_p1) target bundleno = 464 (0x1d0), region = 40  ;;  %s1351_s20 = sshll.u32 (!%p226_p1), %s256_s19, 3 }
  0x1f   : > { %s1353_s21 = sshll.u32 (!%p226_p1), %s1239_s8, 7  ;;  %s258_s12 = scalar_lea.vmem (!%p226_p1), [#allocation6], %s1351_s20 }
  0x20   : > { %s278_s22 = sld [smem:[#allocation5 + %s1353_s21]] (!%p226_p1) }
  0x25   : > { %s1484_s8 = smov (!%p263_p2, %s1239_s8), 1 }
  0x26   : > { %s1021_s23 = sshll.u32 %s1484_s8, 3  ;;  %p279_p3 = scmp.gt.s32.totalorder %s278_s22, 0 }
  0x27   : > { %s1359_s26 = scalar_lea.vmem %s1469_s3, %s1021_s23  ;;  %p1023_p4 = scmp.lt.s32.totalorder %s278_s22, 63 }
  0x28   : > { %s1486_s22 = smov (!%p279_p3, %s278_s22), 0 }
  0x29   : > { %s1488_s22 = smov (!%p1023_p4, %s1486_s22), 63 }
  0x2a   : > { %s283_s11 = scalar_lea.vmem %s1467_s1, %s1488_s22 }
  0x2b   : > { %v301_v0 = vld [vmem:[%s283_s11] sm:$0x1] }
  0x2c   : > { %302 = vst [vmem:[#allocation2] sm:$0x1] %v301_v0 }
  0x2d   : > { %327 = vsyncadd [#allocation3], 16  ;;  %s335_s14 = sadd.s32 1, %s1353_s21 }
  0x2e   : > { %s336_s8 = sld [smem:[#allocation5 + %s335_s14]] }
  0x34   : > { %p337_p5 = scmp.gt.s32.totalorder %s336_s8, 0  ;;  %p1029_p6 = scmp.lt.s32.totalorder %s336_s8, 63 }
  0x36   : > { %s1490_s8 = smov (!%p337_p5, %s336_s8), 0 }
  0x37   : > { %s1492_s8 = smov (!%p1029_p6, %s1490_s8), 63 }
  0x38   : > { %s341_s24 = scalar_lea.vmem %s1467_s1, %s1492_s8 }
  0x39   : > { %v360_v1 = vld [vmem:[%s341_s24] sm:$0x1] }
  0x3a   : > { %361 = vst [vmem:[#allocation2 + $0x1] sm:$0x1] %v360_v1 }
  0x3b   : > { %386 = vsyncadd [#allocation3], 16  ;;  %s394_s22 = sadd.s32 2, %s1353_s21 }
  0x3c   : > { %s395_s25 = sld [smem:[#allocation5 + %s394_s22]] }
  0x42   : > { %p396_p7 = scmp.gt.s32.totalorder %s395_s25, 0  ;;  %p1035_p8 = scmp.lt.s32.totalorder %s395_s25, 63 }
  0x44   : > { %s1494_s25 = smov (!%p396_p7, %s395_s25), 0 }
  0x45   : > { %s1496_s25 = smov (!%p1035_p8, %s1494_s25), 63 }
  0x46   : > { %s400_s11 = scalar_lea.vmem %s1467_s1, %s1496_s25 }
  0x47   : > { %v419_v2 = vld [vmem:[%s400_s11] sm:$0x1] }
  0x48   : > { %420 = vst [vmem:[#allocation2 + $0x2] sm:$0x1] %v419_v2 }
  0x49   : > { %445 = vsyncadd [#allocation3], 16  ;;  %s453_s14 = sadd.s32 3, %s1353_s21 }
  0x4a   : > { %s454_s8 = sld [smem:[#allocation5 + %s453_s14]] }
  0x50   : > { %p455_p10 = scmp.gt.s32.totalorder %s454_s8, 0  ;;  %p1041_p11 = scmp.lt.s32.totalorder %s454_s8, 63 }
  0x52   : > { %s1498_s8 = smov (!%p455_p10, %s454_s8), 0 }
  0x53   : > { %s1500_s8 = smov (!%p1041_p11, %s1498_s8), 63 }
  0x54   : > { %s459_s24 = scalar_lea.vmem %s1467_s1, %s1500_s8 }
  0x55   : > { %v478_v3 = vld [vmem:[%s459_s24] sm:$0x1] }
  0x56   : > { %479 = vst [vmem:[#allocation2 + $0x3] sm:$0x1] %v478_v3 }
  0x57   : > { %504 = vsyncadd [#allocation3], 16  ;;  %s512_s22 = sadd.s32 4, %s1353_s21 }
  0x58   : > { %s513_s25 = sld [smem:[#allocation5 + %s512_s22]] }
  0x5e   : > { %p514_p12 = scmp.gt.s32.totalorder %s513_s25, 0  ;;  %p1047_p0 = scmp.lt.s32.totalorder %s513_s25, 63 }
  0x60   : > { %s1502_s25 = smov (!%p514_p12, %s513_s25), 0 }
  0x61   : > { %s1504_s25 = smov (!%p1047_p0, %s1502_s25), 63 }
  0x62   : > { %s518_s11 = scalar_lea.vmem %s1467_s1, %s1504_s25 }
  0x63   : > { %v537_v4 = vld [vmem:[%s518_s11] sm:$0x1] }
  0x64   : > { %538 = vst [vmem:[#allocation2 + $0x4] sm:$0x1] %v537_v4 }
  0x65   : > { %563 = vsyncadd [#allocation3], 16  ;;  %s571_s14 = sadd.s32 5, %s1353_s21 }
  0x66   : > { %s572_s8 = sld [smem:[#allocation5 + %s571_s14]] }
  0x6c   : > { %p573_p1 = scmp.gt.s32.totalorder %s572_s8, 0  ;;  %p1053_p2 = scmp.lt.s32.totalorder %s572_s8, 63 }
  0x6e   : > { %s1506_s8 = smov (!%p573_p1, %s572_s8), 0 }
  0x6f   : > { %s1508_s8 = smov (!%p1053_p2, %s1506_s8), 63 }
  0x70   : > { %s577_s24 = scalar_lea.vmem %s1467_s1, %s1508_s8 }
  0x71   : > { %v596_v5 = vld [vmem:[%s577_s24] sm:$0x1] }
  0x72   : > { %597 = vst [vmem:[#allocation2 + $0x5] sm:$0x1] %v596_v5 }
  0x73   : > { %622 = vsyncadd [#allocation3], 16  ;;  %s630_s22 = sadd.s32 6, %s1353_s21 }
  0x74   : > { %s631_s25 = sld [smem:[#allocation5 + %s630_s22]] }
  0x7a   : > { %p632_p3 = scmp.gt.s32.totalorder %s631_s25, 0  ;;  %p1059_p4 = scmp.lt.s32.totalorder %s631_s25, 63 }
  0x7c   : > { %s1510_s25 = smov (!%p632_p3, %s631_s25), 0 }
  0x7d   : > { %s1512_s25 = smov (!%p1059_p4, %s1510_s25), 63 }
  0x7e   : > { %s636_s11 = scalar_lea.vmem %s1467_s1, %s1512_s25 }
  0x7f   : > { %v655_v6 = vld [vmem:[%s636_s11] sm:$0x1] }
  0x80   : > { %656 = vst [vmem:[#allocation2 + $0x6] sm:$0x1] %v655_v6 }
  0x81   : > { %681 = vsyncadd [#allocation3], 16  ;;  %s689_s14 = sadd.s32 7, %s1353_s21  ;;  %v742_v8 = vld [vmem:[%s1359_s26] sm:$0xff] }
  0x82   : > { %s690_s8 = sld [smem:[#allocation5 + %s689_s14]] }
  0x88   : > { %p691_p5 = scmp.gt.s32.totalorder %s690_s8, 0  ;;  %p1065_p6 = scmp.lt.s32.totalorder %s690_s8, 63 }
  0x8a   : > { %s1514_s8 = smov (!%p691_p5, %s690_s8), 0 }
  0x8b   : > { %s1516_s8 = smov (!%p1065_p6, %s1514_s8), 63 }
  0x8c   : > { %s695_s24 = scalar_lea.vmem %s1467_s1, %s1516_s8 }
  0x8d   : > { %v714_v7 = vld [vmem:[%s695_s24] sm:$0x1] }
  0x8e   : > { %715 = vst [vmem:[#allocation2 + $0x7] sm:$0x1] %v714_v7 }
  0x8f   : > { %740 = vsyncadd [#allocation3], 16  ;;  %v1250_v9 = vmov 0   ;;  %vm747_vm0 = vcmp.eq.s32.totalorder %v742_v8, 1  ;;  %v743_v11 = vlaneseq  ;;  %v741_v15 = vld [vmem:[%s1470_s4] sm:$0x3] }
  0x90   : > { %1150 = vset.pattern.permute.xlu0 %v1250_v9  ;;  %v748_v10 = vsel %vm747_vm0, 1, %v1250_v9  ;;  %v758_v18 = vld [vmem:[%s1468_s2] sm:$0xff] }
  0x91   : > { %750 = vperm.xlu0 %1150, %v748_v10   ;;  %v744_v12 = vshrl.u32 %v743_v11, 7 }
  0x93   : > { %v745_v13 = vsub.s32 0, %v744_v12  ;;  %v755_v14 = vsub.s32 1, %v744_v12 }
  0x95   : > { %v746_v16 = vrot.slane %v741_v15, %v745_v13  ;;  %v756_v17 = vrot.slane %v741_v15, %v755_v14 }
 0x110   : > { %v751_v19 = vpop.permute.xlu0 %750 }
 0x111   : > { %vm752_vm1 = vcmp.eq.s32.totalorder %v751_v19, 1 }
 0x112   : > { %v757_v20 = vsel %vm752_vm1, %v756_v17, %v746_v16 }
 0x113   : > { %v759_v21 = vadd.f32 %v758_v18, %v757_v20 }
 0x114   : > { %1219 = dma.done.wait [#allocation3], 128 }
 0x115   : > { %1220 = vsyncadd [#allocation3], 4294967168  ;;  %v777_v22 = vld [vmem:[#allocation2] sm:$0xff]  ;;  %vm779_vm2 = vcmask 261120   ;;  %s827_s16 = sshll.u32 %s258_s12, 4  ;;  %s1414_s22 = scalar_lea.hbm %s1473_s7, %s1353_s21  ;;  %s1416_s16 = int_to_ptr.vmem [resolvable:$true] %s827_s16 }
 0x116   : > { %v778_v23 = vadd.f32 %v777_v22, %v759_v21  ;;  %v1070_v36 = vld [vmem:[%s1471_s5] ss:$0 sm:$0xff]  ;;  %s813_s25 = scalar_lea.sflag [#allocation7], %s256_s19  ;;  %s1165_s27 = scalar_lea.vmem %s1416_s16, 128 }
 0x117   : > { %v1071_v38 = vld [vmem:[%s1472_s6] ss:$0 sm:$0xff]  ;;  %p1166_p7 = scmp.ne.s32.totalorder %s1416_s16, %s1165_s27  ;;  %s1251_s28 = smov [#allocation6]  }
 0x118   : > { %v780_v24 = vsel %vm779_vm2, %v778_v23, 0.0  ;;  %v783_v25 = vmul.f32 %v778_v23, %v778_v23  ;;  %s1169_s26 = sshll.u32 %s1251_s28, 4  ;;  %s1170_s26 = int_to_ptr.vmem [resolvable:$false] %s1169_s26 }
 0x119   : > { %781 = vadd.xlane.f32.xlu0 %v780_v24  ;;  %p1167_p8 = pnand %p1166_p7, %p1333_p9  ;;  %s1171_s21 = scalar_lea.vmem %s1170_s26, 256 }
 0x11a   : > { %v784_v26 = vsel %vm779_vm2, %v783_v25, 0.0  ;;  %p1172_p11 = scmp.lt.s32.totalorder %s1416_s16, %s1170_s26  ;;  %p1173_p12 = scmp.lt.s32.totalorder %s1171_s21, %s1165_s27 }
 0x11b   : > { %p1168_p10 = pneg %p1167_p8 }
 0x11c   : > { %p1174_p0 = por %p1173_p12, %p1172_p11 }
 0x11d   : > { %785 = vadd.xlane.f32.xlu0 %v784_v26 }
 0x11e   : > { %p1175_p1 = pnand %p1174_p0, %p1168_p10 }
 0x1a6   : > { %v782_v27 = vpop.xlane.xlu0 %781 }
 0x1a7   : > { %v787_v28 = vmul.f32 0.03125, %v782_v27 }
 0x1a9   : > { %v789_v30 = vmul.f32 %v787_v28, %v787_v28  ;;  %v791_v34 = vsub.f32 %v778_v23, %v787_v28 }
 0x1aa   : > { %v786_v29 = vpop.xlane.xlu0 %785 }
 0x1ab   : > { %v788_v31 = vmul.f32 0.03125, %v786_v29 }
 0x1ad   : > { %v790_v32 = vsub.f32 %v788_v31, %v789_v30 }
 0x1af   : > { %v792_v33 = vadd.f32 1e-12, %v790_v32 }
 0x1b1   : > { %1151 = vrsqrt.f32 %v792_v33 }
 0x1bb   : > { %v1152_v35 = vpop.eup %1151 }
 0x1bc   : > { %v794_v37 = vmul.f32 %v1152_v35, %v791_v34 }
 0x1be   : > { %v802_v39 = vmul.f32 %v1070_v36, %v794_v37 }
 0x1c0   : > { %v810_v40 = vadd.f32 %v1071_v38, %v802_v39 }
 0x1c2   : > { %811 = vst.msk [vmem:[%s258_s12] sm:$0xff] %vm779_vm2, %v810_v40 }
 0x1c3   : > { %1178 = shalt.err (!%p1175_p1)
}
 0x1c4   : > { %s1179_s19 = scalar_lea.hbm %s1414_s22, 128  ;;  %s1183_s11 = scalar_lea.hbm %s1473_s7, 256 }
 0x1c5   : > { %p1180_p2 = scmp.ne.s32.totalorder %s1414_s22, %s1179_s19  ;;  %p1184_p5 = scmp.lt.u32.totalorder %s1414_s22, %s1473_s7 }
 0x1c6   : > { %p1185_p6 = scmp.lt.u32.totalorder %s1183_s11, %s1179_s19  ;;  %p1187_p8 = scmp.lt.u32.totalorder %s1179_s19, %s1414_s22 }
 0x1c7   : > { %p1181_p3 = pnand %p1180_p2, %p1333_p9 }
 0x1c8   : > { %p1186_p7 = por %p1185_p6, %p1184_p5 }
 0x1c9   : > { %p1182_p4 = pneg %p1181_p3 }
 0x1ca   : > { %p1188_p10 = por %p1187_p8, %p1186_p7 }
 0x1cc   : > { %p1189_p11 = pnand %p1188_p10, %p1182_p4 }
 0x1ce   : > { %1192 = shalt.err (!%p1189_p11)
}
 0x1cf   : > { %1093 = dma.vmem_to_hbm [thread:$0]  (%p1333_p9), %s1416_s16, 128, %s1414_s22, %s813_s25  }
 0x1d0 PF: > { %p1099_p12 = scmp.ge.s32.totalorder %s1247_s10, 2  ;;  %s839_s23 = sand.u32 1, %s1227_s29  }
 0x1d1   : > { %s840_s24 = scalar_lea.sflag [#allocation7], %s839_s23 }
 0x1d2   : > { %p1096_p0 = pnand %p1099_p12, %p1340_p13 }
 0x1d4   : > { %1222 = dma.done.wait (!%p1096_p0), %s840_s24, 128  }
 0x1d5   : > { %1224 = vsyncadd (!%p1096_p0), %s840_s24, 4294967168  ;;  %s26_s10 = sadd.s32 1, %s1247_s10   ;;  %s1476_s29 = smov %s1231_s30 }
 0x1d6   : > { %p23_p1 = scmp.ge.s32.totalorder %s26_s10, 4   ;;  %s1477_s30 = smov %s1235_s0 }
 0x1d7   : > { %s1478_s0 = smov %s1346_s18  ;;  %s1479_s8 = smov %s1243_s9 }
 0x1d8   : > { %s1480_s9 = smov %s1482_s13  ;;  %25 = sbr.rel (!%p23_p1) target bundleno = 19 (0x13), region = 413 }
 0x1df   :  { %845 = vsyncpa [#allocation7], 1 }
 0x1e0   :  { %847 = vsyncpa [#allocation7 + $0x1], 1 }
 0x1e1   :  { %848 = vsyncmov [#allocation3] }
 0x1e4   :  { %s849_s15 = vpop.sfrf %848 }
 0x1e5   :  { %p1076_p9 = scmp.ne.s32.totalorder %s849_s15, 0 }
 0x1e7   :  { %853 = shalt.err (%p1076_p9)  }

</bundles_post_ra>
